<compile_context>
chip_gen: v7x
topology: tpu7x:2x2x1
jax: 0.10.0
libtpu: 0.0.40
codegen_flags: <defaults>
</compile_context>

<pallas_src>
import jax
import jax.numpy as jnp
from jax.experimental import pallas as pl
from jax.experimental.pallas import tpu as pltpu

QUANTILES = (0.1, 0.5, 0.9)
_LANES = 128
_SUBLANES = 8


def _cdiv(a, b):
    return -(-a // b)


def _round_down(a, b):
    return (a // b) * b


def _nan_to_num(x):
    # torch.nan_to_num(x, nan=0.0, posinf=1.0, neginf=-1.0)  (x is f32 here)
    x = jnp.where(jnp.isnan(x), 0.0, x)
    x = jnp.where(x == jnp.inf, 1.0, x)
    x = jnp.where(x == -jnp.inf, -1.0, x)
    return x


def _num_tensorcores():
    """TensorCores per chip (1 on v5e/v6e, 2 on v7x); best-effort probe, safe fallback."""
    try:
        info = pltpu.get_tpu_info()
    except Exception:
        return 1
    for name in ("num_cores", "core_count", "num_tensorcores", "num_tensor_cores",
                 "tensorcores_per_chip", "cores_per_chip"):
        v = getattr(info, name, None)
        if isinstance(v, int) and v >= 1:
            return min(v, 2)
    return 1


def _make_kernel(*, tile_m, k_tiles, valid_rows, needs_mask, sanitize):
    groups = tile_m // _SUBLANES

    def kernel(p_ref, t_ref, e_ref, q_ref, o_ref):
        i = pl.program_id(0)
        k = pl.program_id(1)

        @pl.when(k == 0)
        def _init():
            o_ref[...] = jnp.zeros_like(o_ref)

        preds = p_ref[...].astype(jnp.float32)     # (tile_m, Q*128) interleaved layout
        target = t_ref[...].astype(jnp.float32)    # (tile_m, 128)   compact layout
        if sanitize:
            preds = _nan_to_num(preds)
            target = _nan_to_num(target)

        # Expand the compact target tile to the interleaved layout on the (otherwise
        # idle) MXU: t_exp[r, j] = target[r, j // Q].  The 0/1 expansion matrix is
        # bf16-exact; the hi/lo split keeps the result within ~1e-5 of full f32 no
        # matter which precision mode the matmul uses.
        t_hi = target.astype(jnp.bfloat16)
        t_lo = (target - t_hi.astype(jnp.float32)).astype(jnp.bfloat16)
        e = e_ref[...]                              # (128, Q*128) bf16, 0/1
        t_exp = (jnp.dot(t_hi, e, preferred_element_type=jnp.float32)
                 + jnp.dot(t_lo, e, preferred_element_type=jnp.float32))

        d = preds - t_exp
        if needs_mask:
            # Neutralize rows beyond the valid extent (partial / excess blocks).
            start = (i * k_tiles + k) * tile_m
            row = jax.lax.broadcasted_iota(jnp.int32, (tile_m, 1), 0) + start
            d = jnp.where(row < valid_rows, d, 0.0)

        # pinball: max((q-1)*e, q*e) with e = target - pred  ==  max(d, 0) - q*d
        contrib = jnp.maximum(d, 0.0) - q_ref[...] * d

        # Fold sublane groups onto the resident (1, 8, Q*128) output block: pure
        # vreg-wise adds, no cross-lane work and no divide on the hot path.
        o_ref[...] += jnp.sum(contrib.reshape(groups, _SUBLANES, -1), axis=0)[None]

    return kernel


def quantile_loss(preds, target, quantiles=QUANTILES, *, tile_rows=2048,
                  num_parallel=None, sanitize=True):
    """preds: (B, T, Qp), target: (B, T, 1) (or (B, T)). Returns scalar f32 loss."""
    quantiles = tuple(float(q) for q in quantiles)
    Q = len(quantiles)
    B, T, Qp = preds.shape
    if Qp < Q:
        # matches torch `preds.expand(-1, -1, len(self.quantiles))` (requires Qp == 1)
        preds = jnp.broadcast_to(preds, (B, T, Q))
    elif Qp > Q:
        preds = preds[..., :Q]

    N = B * T
    W = Q * _LANES

    # Native interleaved layout: free reshapes of the contiguous buffers.
    p_flat = preds.reshape(-1)
    t_flat = target.reshape(N)
    n_pad = _cdiv(N, _LANES) * _LANES
    if n_pad < _SUBLANES * _LANES:          # tiny inputs: need at least 8 sublane rows
        n_pad = _SUBLANES * _LANES
    if n_pad != N:
        # Only O(N) wrapper copy left; triggers only when B*T % 128 != 0.
        # Zero padding -> zero loss contribution.
        p_flat = jnp.pad(p_flat, (0, Q * (n_pad - N)))
        t_flat = jnp.pad(t_flat, (0, n_pad - N))
    rows = n_pad // _LANES
    preds2d = p_flat.reshape(rows, W)
    target2d = t_flat.reshape(rows, _LANES)

    # Tile sizing: multiple of 8 sublane rows, capped by VMEM and by the array itself.
    vmem_cap_rows = max(_SUBLANES, _round_down(3_000_000 // (W + _LANES), _SUBLANES))
    tile_m = max(_SUBLANES, _round_down(min(tile_rows, vmem_cap_rows), _SUBLANES))
    tile_m = min(tile_m, _round_down(rows, _SUBLANES))
    total_blocks = _cdiv(rows, tile_m)

    if num_parallel is None:
        num_parallel = _num_tensorcores()
    np_eff = max(1, min(num_parallel, total_blocks))
    k_tiles = _cdiv(total_blocks, np_eff)
    needs_mask = (np_eff * k_tiles * tile_m) != rows

    # Constant 0/1 expansion matrix (128, Q*128) and per-lane quantile levels (1, Q*128).
    lane = jnp.arange(W)
    e_mat = (jnp.arange(_LANES)[:, None] == (lane // Q)[None, :]).astype(jnp.bfloat16)
    q_vec = jnp.asarray(quantiles, dtype=jnp.float32)[lane % Q].reshape(1, W)

    def block_map(i, k):
        # Contiguous per-core block ranges; excess blocks are clamped to a valid
        # index and fully masked out inside the kernel.
        idx = jnp.minimum(i * k_tiles + k, total_blocks - 1)
        return (idx, 0)

    kernel = _make_kernel(tile_m=tile_m, k_tiles=k_tiles, valid_rows=rows,
                          needs_mask=needs_mask, sanitize=sanitize)

    out = pl.pallas_call(
        kernel,
        out_shape=jax.ShapeDtypeStruct((np_eff, _SUBLANES, W), jnp.float32),
        grid_spec=pltpu.PrefetchScalarGridSpec(
            num_scalar_prefetch=0,
            grid=(np_eff, k_tiles),
            in_specs=[
                pl.BlockSpec((tile_m, W), block_map),
                pl.BlockSpec((tile_m, _LANES), block_map),
                pl.BlockSpec((_LANES, W), lambda i, k: (0, 0)),
                pl.BlockSpec((1, W), lambda i, k: (0, 0)),
            ],
            out_specs=pl.BlockSpec((1, _SUBLANES, W), lambda i, k: (i, 0, 0)),
        ),
        compiler_params=pltpu.CompilerParams(
            dimension_semantics=("parallel", "arbitrary"),
            vmem_limit_bytes=32 * 1024 * 1024,
        ),
    )(preds2d, target2d, e_mat, q_vec)

    # Tiny final reduce + single multiply by 1/(Q*N) (true, un-padded count).
    return jnp.sum(out) * (1.0 / (Q * N))


def _reference_quantile_loss(preds, target, quantiles=QUANTILES):
    preds = jnp.nan_to_num(preds.astype(jnp.float32), nan=0.0, posinf=1.0, neginf=-1.0)
    target = jnp.nan_to_num(target.astype(jnp.float32), nan=0.0, posinf=1.0, neginf=-1.0)
    Q = len(quantiles)
    if preds.shape[-1] < Q:
        preds = jnp.broadcast_to(preds, preds.shape[:-1] + (Q,))
    losses = []
    for i, q in enumerate(quantiles):
        errors = target - preds[..., i:i + 1]
        losses.append(jnp.mean(jnp.maximum((q - 1.0) * errors, q * errors)))
    return jnp.mean(jnp.stack(losses))


if __name__ == "__main__":
    key = jax.random.PRNGKey(0)
    k1, k2, k3, k4 = jax.random.split(key, 4)

    # Small shape implied by the module's (B, T, num_quantiles) forward.
    B, T, Q = 2, 8, 3
    preds = jax.random.normal(k1, (B, T, Q), dtype=jnp.float32)
    target = jax.random.normal(k2, (B, T, 1), dtype=jnp.float32)
    loss = jax.block_until_ready(quantile_loss(preds, target))
    ref = _reference_quantile_loss(preds, target)
    assert jnp.allclose(loss, ref, rtol=1e-4, atol=1e-6), (loss, ref)

    # Qp == 1 -> expanded across quantiles (torch `expand` path).
    loss_1q = jax.block_until_ready(quantile_loss(preds[..., :1], target))
    ref_1q = _reference_quantile_loss(preds[..., :1], target)
    assert jnp.allclose(loss_1q, ref_1q, rtol=1e-4, atol=1e-6), (loss_1q, ref_1q)

    # Larger ragged shape: exercises the ragged pad (B*T % 128 != 0), the in-kernel
    # row mask for the partial final block and the nan/inf sanitization path.
    B2, T2 = 3, 700
    preds2 = jax.random.normal(k3, (B2, T2, Q), dtype=jnp.float32)
    preds2 = preds2.at[0, 0, 0].set(jnp.nan)
    preds2 = preds2.at[0, 1, 1].set(jnp.inf)
    preds2 = preds2.at[0, 2, 2].set(-jnp.inf)
    target2 = jax.random.normal(k4, (B2, T2, 1), dtype=jnp.float32)
    ref2 = _reference_quantile_loss(preds2, target2)

    loss2 = jax.block_until_ready(quantile_loss(preds2, target2))
    assert jnp.allclose(loss2, ref2, rtol=1e-4, atol=1e-5), (loss2, ref2)

    # Small tiles -> multi-block grid (partial blocks + clamped excess blocks).
    loss2b = jax.block_until_ready(quantile_loss(preds2, target2, tile_rows=8))
    assert jnp.allclose(loss2b, ref2, rtol=1e-4, atol=1e-5), (loss2b, ref2)

    # bf16 inputs stay bf16 on the wire (half the HBM traffic); math is f32 in-kernel.
    loss_bf16 = jax.block_until_ready(
        quantile_loss(preds2.astype(jnp.bfloat16), target2.astype(jnp.bfloat16)))
    ref_bf16 = _reference_quantile_loss(preds2.astype(jnp.bfloat16),
                                        target2.astype(jnp.bfloat16))
    assert jnp.allclose(loss_bf16, ref_bf16, rtol=1e-3, atol=1e-4), (loss_bf16, ref_bf16)

    print("KERNEL_OK")
</pallas_src>

<mosaic_0001>
module attributes {stable_mosaic.version = 11 : i64} {
  func.func @kernel(%arg0: i32, %arg1: i32, %arg2: memref<8x384xf32, #tpu.memory_space<vmem>>, %arg3: memref<8x128xf32, #tpu.memory_space<vmem>>, %arg4: memref<128x384xbf16, #tpu.memory_space<vmem>>, %arg5: memref<1x384xf32, #tpu.memory_space<vmem>>, %arg6: memref<1x8x384xf32, #tpu.memory_space<vmem>>) attributes {dimension_semantics = [#tpu.dimension_semantics<parallel>, #tpu.dimension_semantics<arbitrary>], iteration_bounds = array<i64: 1, 1>, scalar_prefetch = 0 : i64, scratch_operands = 0 : i64, tpu.core_type = #tpu.core_type<tc>, window_params = [{transform_indices = @transform_0, window_bounds = array<i64: 8, 384>}, {transform_indices = @transform_1, window_bounds = array<i64: 8, 128>}, {pipeline_mode = #tpu.pipeline_mode<synchronous>, transform_indices = @transform_2, window_bounds = array<i64: 128, 384>}, {pipeline_mode = #tpu.pipeline_mode<synchronous>, transform_indices = @transform_3, window_bounds = array<i64: 1, 384>}, {transform_indices = @transform_4, window_bounds = array<i64: 1, 8, 384>}]} {
    %c0_i32 = arith.constant 0 : i32
    %0 = arith.cmpi eq, %arg1, %c0_i32 : i32
    %1 = arith.extui %0 : i1 to i32
    %c0_i32_0 = arith.constant 0 : i32
    %2 = arith.cmpi ne, %1, %c0_i32_0 : i32
    scf.if %2 {
      %cst_27 = arith.constant 0.000000e+00 : f32
      %48 = vector.broadcast %cst_27 : f32 to vector<1x8x384xf32>
      %c0_28 = arith.constant 0 : index
      %c0_29 = arith.constant 0 : index
      %c0_30 = arith.constant 0 : index
      %49 = vector.load %arg6[%c0_28, %c0_29, %c0_30] : memref<1x8x384xf32, #tpu.memory_space<vmem>>, vector<1x8x384xf32>
      tpu.vector_store %arg6[%c0_28, %c0_29, %c0_30], %48 {strides = array<i32>} : memref<1x8x384xf32, #tpu.memory_space<vmem>>, vector<1x8x384xf32>,
    } else {
    }
    %c0 = arith.constant 0 : index
    %c0_1 = arith.constant 0 : index
    %3 = vector.load %arg2[%c0, %c0_1] : memref<8x384xf32, #tpu.memory_space<vmem>>, vector<8x384xf32>
    %c0_2 = arith.constant 0 : index
    %c0_3 = arith.constant 0 : index
    %4 = vector.load %arg3[%c0_2, %c0_3] : memref<8x128xf32, #tpu.memory_space<vmem>>, vector<8x128xf32>
    %5 = arith.cmpf one, %3, %3 : vector<8x384xf32>
    %cst = arith.constant 0.000000e+00 : f32
    %6 = vector.broadcast %cst : f32 to vector<8x384xf32>
    %7 = arith.select %5, %6, %3 : vector<8x384xi1>, vector<8x384xf32>
    %cst_4 = arith.constant 0x7F800000 : f32
    %8 = vector.broadcast %cst_4 : f32 to vector<8x384xf32>
    %9 = arith.cmpf oeq, %7, %8 : vector<8x384xf32>
    %cst_5 = arith.constant 1.000000e+00 : f32
    %10 = vector.broadcast %cst_5 : f32 to vector<8x384xf32>
    %11 = arith.select %9, %10, %7 : vector<8x384xi1>, vector<8x384xf32>
    %cst_6 = arith.constant 0xFF800000 : f32
    %12 = vector.broadcast %cst_6 : f32 to vector<8x384xf32>
    %13 = arith.cmpf oeq, %11, %12 : vector<8x384xf32>
    %cst_7 = arith.constant -1.000000e+00 : f32
    %14 = vector.broadcast %cst_7 : f32 to vector<8x384xf32>
    %15 = arith.select %13, %14, %11 : vector<8x384xi1>, vector<8x384xf32>
    %16 = arith.cmpf one, %4, %4 : vector<8x128xf32>
    %cst_8 = arith.constant 0.000000e+00 : f32
    %17 = vector.broadcast %cst_8 : f32 to vector<8x128xf32>
    %18 = arith.select %16, %17, %4 : vector<8x128xi1>, vector<8x128xf32>
    %cst_9 = arith.constant 0x7F800000 : f32
    %19 = vector.broadcast %cst_9 : f32 to vector<8x128xf32>
    %20 = arith.cmpf oeq, %18, %19 : vector<8x128xf32>
    %cst_10 = arith.constant 1.000000e+00 : f32
    %21 = vector.broadcast %cst_10 : f32 to vector<8x128xf32>
    %22 = arith.select %20, %21, %18 : vector<8x128xi1>, vector<8x128xf32>
    %cst_11 = arith.constant 0xFF800000 : f32
    %23 = vector.broadcast %cst_11 : f32 to vector<8x128xf32>
    %24 = arith.cmpf oeq, %22, %23 : vector<8x128xf32>
    %cst_12 = arith.constant -1.000000e+00 : f32
    %25 = vector.broadcast %cst_12 : f32 to vector<8x128xf32>
    %26 = arith.select %24, %25, %22 : vector<8x128xi1>, vector<8x128xf32>
    %27 = arith.truncf %26 : vector<8x128xf32> to vector<8x128xbf16>
    %28 = arith.extf %27 : vector<8x128xbf16> to vector<8x128xf32>
    %29 = arith.subf %26, %28 : vector<8x128xf32>
    %30 = arith.truncf %29 : vector<8x128xf32> to vector<8x128xbf16>
    %c0_13 = arith.constant 0 : index
    %c0_14 = arith.constant 0 : index
    %31 = vector.load %arg4[%c0_13, %c0_14] : memref<128x384xbf16, #tpu.memory_space<vmem>>, vector<128x384xbf16>
    %cst_15 = arith.constant dense<0.000000e+00> : vector<8x384xf32>
    %32 = tpu.matmul %27, %31, %cst_15 {dimension_numbers = #tpu.dot_dimension_numbers<[1], [0], [0], [1], [0, 0, 1, 1], [], []>} : vector<8x128xbf16>, vector<128x384xbf16>, vector<8x384xf32> -> vector<8x384xf32>
    %cst_16 = arith.constant dense<0.000000e+00> : vector<8x384xf32>
    %33 = tpu.matmul %30, %31, %cst_16 {dimension_numbers = #tpu.dot_dimension_numbers<[1], [0], [0], [1], [0, 0, 1, 1], [], []>} : vector<8x128xbf16>, vector<128x384xbf16>, vector<8x384xf32> -> vector<8x384xf32>
    %34 = arith.addf %32, %33 : vector<8x384xf32>
    %35 = arith.subf %15, %34 : vector<8x384xf32>
    %cst_17 = arith.constant 0.000000e+00 : f32
    %36 = vector.broadcast %cst_17 : f32 to vector<8x384xf32>
    %37 = arith.maximumf %35, %36 : vector<8x384xf32>
    %c0_18 = arith.constant 0 : index
    %c0_19 = arith.constant 0 : index
    %38 = vector.load %arg5[%c0_18, %c0_19] : memref<1x384xf32, #tpu.memory_space<vmem>>, vector<1x384xf32>
    %39 = vector.broadcast %38 : vector<1x384xf32> to vector<8x384xf32>
    %40 = arith.mulf %39, %35 : vector<8x384xf32>
    %41 = arith.subf %37, %40 : vector<8x384xf32>
    %c0_20 = arith.constant 0 : index
    %c0_21 = arith.constant 0 : index
    %c0_22 = arith.constant 0 : index
    %42 = vector.load %arg6[%c0_20, %c0_21, %c0_22] : memref<1x8x384xf32, #tpu.memory_space<vmem>>, vector<1x8x384xf32>
    %43 = vector.shape_cast %41 : vector<8x384xf32> to vector<1x8x384xf32>
    %cst_23 = arith.constant dense<0.000000e+00> : vector<8x384xf32>
    %44 = vector.multi_reduction <add>, %43, %cst_23 [0] : vector<1x8x384xf32> to vector<8x384xf32>
    %45 = vector.shape_cast %44 : vector<8x384xf32> to vector<1x8x384xf32>
    %46 = arith.addf %42, %45 : vector<1x8x384xf32>
    %c0_24 = arith.constant 0 : index
    %c0_25 = arith.constant 0 : index
    %c0_26 = arith.constant 0 : index
    %47 = vector.load %arg6[%c0_24, %c0_25, %c0_26] : memref<1x8x384xf32, #tpu.memory_space<vmem>>, vector<1x8x384xf32>
    tpu.vector_store %arg6[%c0_24, %c0_25, %c0_26], %46 {strides = array<i32>} : memref<1x8x384xf32, #tpu.memory_space<vmem>>, vector<1x8x384xf32>,
    return
  }
  func.func @transform_0(%arg0: i32, %arg1: i32) -> (i32, i32) {
    %c1_i32 = arith.constant 1 : i32
    %0 = arith.muli %arg0, %c1_i32 : i32
    %1 = arith.addi %0, %arg1 : i32
    %c0_i32 = arith.constant 0 : i32
    %2 = arith.minsi %1, %c0_i32 : i32
    %c0_i32_0 = arith.constant 0 : i32
    %c0_i32_1 = arith.constant 0 : i32
    return %2, %c0_i32_0 : i32, i32
  }
  func.func @transform_1(%arg0: i32, %arg1: i32) -> (i32, i32) {
    %c1_i32 = arith.constant 1 : i32
    %0 = arith.muli %arg0, %c1_i32 : i32
    %1 = arith.addi %0, %arg1 : i32
    %c0_i32 = arith.constant 0 : i32
    %2 = arith.minsi %1, %c0_i32 : i32
    %c0_i32_0 = arith.constant 0 : i32
    %c0_i32_1 = arith.constant 0 : i32
    return %2, %c0_i32_0 : i32, i32
  }
  func.func @transform_2(%arg0: i32, %arg1: i32) -> (i32, i32) {
    %c0_i32 = arith.constant 0 : i32
    %c0_i32_0 = arith.constant 0 : i32
    %c0_i32_1 = arith.constant 0 : i32
    return %c0_i32, %c0_i32_0 : i32, i32
  }
  func.func @transform_3(%arg0: i32, %arg1: i32) -> (i32, i32) {
    %c0_i32 = arith.constant 0 : i32
    %c0_i32_0 = arith.constant 0 : i32
    %c0_i32_1 = arith.constant 0 : i32
    return %c0_i32, %c0_i32_0 : i32, i32
  }
  func.func @transform_4(%arg0: i32, %arg1: i32) -> (i32, i32, i32) {
    %c0_i32 = arith.constant 0 : i32
    %c0_i32_0 = arith.constant 0 : i32
    %c0_i32_1 = arith.constant 0 : i32
    return %arg0, %c0_i32, %c0_i32_0 : i32, i32, i32
  }
}

</mosaic_0001>

<bundles_post_ra>
// kernel: tpu_custom_call.1
= control target key start
LH: loop header
LB: loop body
LE: loop exit
PB: predicated region body
PF: predicated region fallthrough
CT: control target
= control target key end

     0   :  { %9 = vsyncpa [#allocation3], 0  ;;  %s871_s0 = inlined_call_operand.hbm [shape: f32[8,384], index: 0, kind: input, shape index: {}]   ;;  %s872_s1 = inlined_call_operand.hbm [shape: f32[8,128], index: 1, kind: input, shape index: {}]   ;;  %s873_s2 = inlined_call_operand.hbm [shape: bf16[128,384], index: 2, kind: input, shape index: {}]   ;;  %s874_s3 = inlined_call_operand.vmem [shape: f32[1,384], index: 3, kind: input, shape index: {}]   ;;  %s875_s4 = inlined_call_operand.hbm [shape: f32[1,8,384], index: 4, kind: output, shape index: {}]  }
   0x1   :  { %10 = vsyncpa [#allocation6], 0 }
   0x2   :  { %11 = vsyncpa [#allocation4], 0  ;;  %s720_s15 = smov [#allocation5]   ;;  %s721_s17 = smov [#allocation2]  }
   0x3   :  { %s39_s16 = sshll.u32 %s720_s15, 4  ;;  %s24_s18 = sshll.u32 %s721_s17, 4  ;;  %s40_s16 = int_to_ptr.vmem [resolvable:$true] %s39_s16  ;;  %s25_s18 = int_to_ptr.vmem [resolvable:$true] %s24_s18 }
   0x4   :  { %s626_s21 = scalar_lea.hbm %s872_s1, 128 }
   0x5   :  { %p627_p0 = scmp.ne.s32.totalorder %s872_s1, %s626_s21  ;;  %p630_p1 = scmp.lt.u32.totalorder %s626_s21, %s872_s1 }
   0x7   :  { %p632_p2 = pnand %p630_p1, %p627_p0 }
   0x9   :  { %635 = shalt.err (!%p632_p2)
}
   0xa   :  { %s636_s26 = scalar_lea.vmem %s40_s16, 128  ;;  %p641_p4 = scmp.lt.s32.totalorder %s40_s16, %s40_s16 }
   0xb   :  { %p637_p3 = scmp.ne.s32.totalorder %s40_s16, %s636_s26  ;;  %p642_p5 = scmp.lt.s32.totalorder %s636_s26, %s636_s26 }
   0xd   :  { %p643_p6 = por %p642_p5, %p641_p4 }
   0xf   :  { %p644_p7 = pnand %p643_p6, %p637_p3 }
  0x11   :  { %647 = shalt.err (!%p644_p7)
}
  0x12   :  { %42 = dma.hbm_to_vmem [thread:$0]  %s872_s1, 128, %s40_s16, [#allocation6]  }
  0x13   :  { %s648_s5 = scalar_lea.hbm %s871_s0, 384 }
  0x14   :  { %p649_p8 = scmp.ne.s32.totalorder %s871_s0, %s648_s5  ;;  %p652_p9 = scmp.lt.u32.totalorder %s648_s5, %s871_s0 }
  0x16   :  { %p654_p10 = pnand %p652_p9, %p649_p8 }
  0x18   :  { %657 = shalt.err (!%p654_p10)
}
  0x19   :  { %s658_s10 = scalar_lea.vmem %s25_s18, 384  ;;  %p663_p12 = scmp.lt.s32.totalorder %s25_s18, %s25_s18 }
  0x1a   :  { %p659_p11 = scmp.ne.s32.totalorder %s25_s18, %s658_s10  ;;  %p664_p13 = scmp.lt.s32.totalorder %s658_s10, %s658_s10 }
  0x1c   :  { %p665_p0 = por %p664_p13, %p663_p12 }
  0x1e   :  { %p666_p1 = pnand %p665_p0, %p659_p11 }
  0x20   :  { %669 = shalt.err (!%p666_p1)
}
  0x21   :  { %27 = dma.hbm_to_vmem [thread:$0]  %s871_s0, 384, %s25_s18, [#allocation3]  }
  0x22   :  { %s722_s12 = smov [#allocation7]   ;;  %s670_s16 = scalar_lea.hbm %s873_s2, 3072 }
  0x23   :  { %s48_s13 = sshll.u32 %s722_s12, 4  ;;  %p671_p2 = scmp.ne.s32.totalorder %s873_s2, %s670_s16  ;;  %s49_s13 = int_to_ptr.vmem [resolvable:$true] %s48_s13 }
  0x24   :  { %p674_p3 = scmp.lt.u32.totalorder %s670_s16, %s873_s2 }
  0x26   :  { %p676_p4 = pnand %p674_p3, %p671_p2 }
  0x28   :  { %679 = shalt.err (!%p676_p4)
}
  0x29   :  { %s680_s22 = scalar_lea.vmem %s49_s13, 3072  ;;  %p685_p6 = scmp.lt.s32.totalorder %s49_s13, %s49_s13 }
  0x2a   :  { %p681_p5 = scmp.ne.s32.totalorder %s49_s13, %s680_s22  ;;  %p686_p7 = scmp.lt.s32.totalorder %s680_s22, %s680_s22 }
  0x2c   :  { %p687_p8 = por %p686_p7, %p685_p6 }
  0x2e   :  { %p688_p9 = pnand %p687_p8, %p681_p5 }
  0x30   :  { %691 = shalt.err (!%p688_p9)
}
  0x31   :  { %s723_s0 = smov 192   ;;  %s724_s18 = smov 12  }
  0x32   :  { %54 = dma.hbm_to_vmem [thread:$0]  %s873_s2, 3072, %s49_s13, [#allocation6], %s723_s0, %s723_s0, %s724_s18  }
  0x33   :  { %714 = dma.done.wait [#allocation3], 384  }
  0x34   :  { %715 = vsyncadd [#allocation3], 4294966912 }
  0x35   :  { %716 = dma.done.wait [#allocation6], 3200  }
  0x36   :  { %717 = vsyncadd [#allocation6], 4294964096  ;;  %v725_v0 = vmov 0.0   ;;  %vm726_vm0 = vmmov 0   ;;  %v727_v1 = vmov 0   ;;  %v83_v18 = vld [vmem:[#allocation5] sm:$0xff]  ;;  %v442_v38 = vlaneseq }
  0x37   :  { %537 = vmatprep.subr.bf16.mxu1 %v725_v0  ;;  %553 = vmatprep.mubr.msk.bf16.mxu1 %vm726_vm0, %v725_v0  ;;  %v794_v2 = vld [vmem:[#allocation7 + $0x4] ss:$12 sps:$4 sm:$0xff]   ;;  %v796_v3 = vld [vmem:[#allocation7 + $0x8] ss:$12 sps:$4 sm:$0xff]   ;;  %v799_v4 = vld [vmem:[#allocation7] ss:$12 sps:$4 sm:$0xff]   ;;  %vm102_vm1 = vcmp.ne.f32.partialorder %v83_v18, %v83_v18 }
  0x38   :  { %304 = vmatprep.mubr.bf16.mxu0 %v727_v1  ;;  %272 = vmatprep.subr.bf16.mxu0 %v794_v2  ;;  %v802_v5 = vld [vmem:[#allocation7 + $0x1c] ss:$12 sps:$4 sm:$0xff]   ;;  %v806_v6 = vld [vmem:[#allocation7 + $0x20] ss:$12 sps:$4 sm:$0xff]   ;;  %v808_v7 = vld [vmem:[#allocation7 + $0x18] ss:$12 sps:$4 sm:$0xff]  }
  0x39   :  { %538 = vmatpush3.bf16.msra.mxu1 %v796_v3  ;;  %273 = vmatpush1.bf16.msra.mxu0 %v799_v4  ;;  %v811_v8 = vld [vmem:[#allocation7 + $0x34] ss:$12 sps:$4 sm:$0xff]   ;;  %v814_v9 = vld [vmem:[#allocation7 + $0x38] ss:$12 sps:$4 sm:$0xff]   ;;  %v818_v10 = vld [vmem:[#allocation7 + $0x30] ss:$12 sps:$4 sm:$0xff]  }
  0x3a   :  { %539 = vmatprep.subr.bf16.mxu1 %v725_v0  ;;  %274 = vmatprep.subr.bf16.mxu0 %v802_v5  ;;  %v821_v11 = vld [vmem:[#allocation7 + $0x4c] ss:$12 sps:$4 sm:$0xff]   ;;  %v824_v12 = vld [vmem:[#allocation7 + $0x50] ss:$12 sps:$4 sm:$0xff]   ;;  %v609_v13 = vld [vmem:[#allocation7 + $0x48] ss:$12 sps:$4 sm:$0xff]  }
  0x3b   :  { %v610_v14 = vld [vmem:[#allocation7 + $0x64] ss:$12 sps:$4 sm:$0xff]   ;;  %v612_v15 = vld [vmem:[#allocation7 + $0x68] ss:$12 sps:$4 sm:$0xff]   ;;  %v613_v16 = vld [vmem:[#allocation7 + $0x60] ss:$12 sps:$4 sm:$0xff]  }
  0x3c   :  { %v614_v17 = vld [vmem:[#allocation7 + $0x7c] ss:$12 sps:$4 sm:$0xff]   ;;  %v616_v19 = vld [vmem:[#allocation7 + $0x80] ss:$12 sps:$4 sm:$0xff]   ;;  %v617_v20 = vld [vmem:[#allocation7 + $0x78] ss:$12 sps:$4 sm:$0xff]  }
  0x3d   :  { %540 = vmatpush3.bf16.msra.mxu1 %v806_v6  ;;  %275 = vmatpush1.bf16.msra.mxu0 %v808_v7  ;;  %v103_v21 = vsel %vm102_vm1, 0.0, %v83_v18  ;;  %v618_v22 = vld [vmem:[#allocation7 + $0x94] ss:$12 sps:$4 sm:$0xff]   ;;  %v620_v24 = vld [vmem:[#allocation7 + $0x98] ss:$12 sps:$4 sm:$0xff]   ;;  %v81_v36 = vld [vmem:[#allocation2 + $0x8] sm:$0xff] }
  0x3e   :  { %541 = vmatprep.subr.bf16.mxu1 %v725_v0  ;;  %276 = vmatprep.subr.bf16.mxu0 %v811_v8  ;;  %vm104_vm2 = vcmp.eq.f32.partialorder %v103_v21, inf  ;;  %v621_v25 = vld [vmem:[#allocation7 + $0x90] ss:$12 sps:$4 sm:$0xff]   ;;  %v622_v27 = vld [vmem:[#allocation7 + $0xac] ss:$12 sps:$4 sm:$0xff]   ;;  %v80_v35 = vld [vmem:[#allocation2] sm:$0xff]  ;;  %vm85_vm6 = vcmp.ne.f32.partialorder %v81_v36, %v81_v36 }
  0x3f   :  { %v105_v23 = vsel %vm104_vm2, 1.0, %v103_v21  ;;  %v624_v29 = vld [vmem:[#allocation7 + $0xb0] ss:$12 sps:$4 sm:$0xff]   ;;  %v625_v31 = vld [vmem:[#allocation7 + $0xa8] ss:$12 sps:$4 sm:$0xff]   ;;  %vm84_vm5 = vcmp.ne.f32.partialorder %v80_v35, %v80_v35  ;;  %v88_v40 = vsel %vm85_vm6, 0.0, %v81_v36 }
  0x40   :  { %vm106_vm3 = vcmp.eq.f32.partialorder %v105_v23, -inf  ;;  %v82_v34 = vld [vmem:[#allocation2 + $0x10] sm:$0xff]  ;;  %v87_v39 = vsel %vm84_vm5, 0.0, %v80_v35  ;;  %v443_v41 = vshrl.u32 %v442_v38, 7  ;;  %vm91_vm9 = vcmp.eq.f32.partialorder %v88_v40, inf }
  0x41   :  { %542 = vmatpush3.bf16.msra.mxu1 %v814_v9  ;;  %277 = vmatpush1.bf16.msra.mxu0 %v818_v10  ;;  %v107_v26 = vsel %vm106_vm3, -1.0, %v105_v23  ;;  %vm86_vm4 = vcmp.ne.f32.partialorder %v82_v34, %v82_v34  ;;  %vm90_vm8 = vcmp.eq.f32.partialorder %v87_v39, inf  ;;  %v94_v44 = vsel %vm91_vm9, 1.0, %v88_v40  ;;  %v440_v46 = vld [vmem:[%s874_s3] sm:$0x7]  ;;  %s728_s3 = smov [#allocation8]  }
  0x42   :  { %543 = vmatprep.subr.bf16.mxu1 %v725_v0  ;;  %278 = vmatprep.subr.bf16.mxu0 %v821_v11  ;;  %v108_v28 = vpack.c.bf16 %v107_v26, %v107_v26  ;;  %v89_v37 = vsel %vm86_vm4, 0.0, %v82_v34  ;;  %v93_v43 = vsel %vm90_vm8, 1.0, %v87_v39  ;;  %v452_v45 = vsub.s32 2, %v443_v41  ;;  %s481_s26 = sshll.u32 %s728_s3, 4  ;;  %s482_s26 = int_to_ptr.vmem [resolvable:$true] %s481_s26 }
  0x43   :  { %vm92_vm7 = vcmp.eq.f32.partialorder %v89_v37, inf  ;;  %vm96_vm11 = vcmp.eq.f32.partialorder %v93_v43, -inf  ;;  %v444_v47 = vsub.s32 0, %v443_v41  ;;  %vm97_vm12 = vcmp.eq.f32.partialorder %v94_v44, -inf  ;;  %s692_s27 = scalar_lea.vmem %s482_s26, 384  ;;  %p697_p11 = scmp.lt.s32.totalorder %s482_s26, %s482_s26 }
  0x44   :  { %v109_v30 = vunpack.c.l.bf16 %v108_v28  ;;  %v95_v42 = vsel %vm92_vm7, 1.0, %v89_v37  ;;  %v448_v48 = vsub.s32 1, %v443_v41  ;;  %v453_v50 = vrot.slane %v440_v46, %v452_v45  ;;  %p693_p10 = scmp.ne.s32.totalorder %s482_s26, %s692_s27  ;;  %p698_p12 = scmp.lt.s32.totalorder %s692_s27, %s692_s27 }
  0x45   :  { %544 = vmatpush3.bf16.msra.mxu1 %v824_v12  ;;  %279 = vmatpush1.bf16.msra.mxu0 %v609_v13  ;;  %vm98_vm10 = vcmp.eq.f32.partialorder %v95_v42, -inf  ;;  %v99_v51 = vsel %vm96_vm11, -1.0, %v93_v43  ;;  %v445_v53 = vrot.slane %v440_v46, %v444_v47  ;;  %v100_v54 = vsel %vm97_vm12, -1.0, %v94_v44 }
  0x46   :  { %545 = vmatprep.subr.bf16.mxu1 %v725_v0  ;;  %280 = vmatprep.subr.bf16.mxu0 %v610_v14  ;;  %v110_v32 = vsub.f32 %v107_v26, %v109_v30  ;;  %v101_v49 = vsel %vm98_vm10, -1.0, %v95_v42  ;;  %v449_v58 = vrot.slane %v440_v46, %v448_v48  ;;  %p699_p13 = por %p698_p12, %p697_p11 }
  0x48   :  { %v111_v33 = vpack.c.bf16 %v110_v32, %v110_v32  ;;  %p700_p0 = pnand %p699_p13, %p693_p10 }
  0x49   :  { %546 = vmatpush3.bf16.msra.mxu1 %v612_v15  ;;  %281 = vmatpush1.bf16.msra.mxu0 %v613_v16 }
  0x4a   :  { %547 = vmatprep.subr.bf16.mxu1 %v725_v0  ;;  %282 = vmatprep.subr.bf16.mxu0 %v614_v17 }
  0x4d   :  { %548 = vmatpush3.bf16.msra.mxu1 %v616_v19  ;;  %283 = vmatpush1.bf16.msra.mxu0 %v617_v20 }
  0x4e   :  { %549 = vmatprep.subr.bf16.mxu1 %v725_v0  ;;  %284 = vmatprep.subr.bf16.mxu0 %v618_v22 }
  0x51   :  { %550 = vmatpush3.bf16.msra.mxu1 %v620_v24  ;;  %285 = vmatpush1.bf16.msra.mxu0 %v621_v25 }
  0x52   :  { %551 = vmatprep.subr.bf16.mxu1 %v725_v0  ;;  %286 = vmatprep.subr.bf16.mxu0 %v622_v27 }
  0x55   :  { %552 = vmatpush3.bf16.msra.mxu1 %v624_v29  ;;  %287 = vmatpush1.bf16.msra.mxu0 %v625_v31 }
  0x56   :  { %557 = vmatprep.subr.bf16.mxu1 %v725_v0  ;;  %353 = vmatprep.subr.bf16.mxu0 %v794_v2 }
  0x58   :  { %554 = vmatmul.mubr.bf16.vlgmr.msra.gmra.mrb[0].mxu1 %v111_v33  ;;  %305 = vmatmul.mubr.bf16.vlgmr.msra.gmra.mrb[0].mxu0 %v111_v33 }
  0x59   :  { %558 = vmatpush3.bf16.msra.mxu1 %v796_v3  ;;  %354 = vmatpush1.bf16.msra.mxu0 %v799_v4 }
  0x5a   :  { %559 = vmatprep.subr.bf16.mxu1 %v725_v0  ;;  %355 = vmatprep.subr.bf16.mxu0 %v802_v5 }
  0x5b   :  { %573 = vmatprep.mubr.msk.bf16.mxu1 %vm726_vm0, %v725_v0  ;;  %385 = vmatprep.mubr.bf16.mxu0 %v727_v1 }
  0x5d   :  { %560 = vmatpush3.bf16.msra.mxu1 %v806_v6  ;;  %356 = vmatpush1.bf16.msra.mxu0 %v808_v7 }
  0x5e   :  { %561 = vmatprep.subr.bf16.mxu1 %v725_v0  ;;  %357 = vmatprep.subr.bf16.mxu0 %v811_v8 }
  0x61   :  { %562 = vmatpush3.bf16.msra.mxu1 %v814_v9  ;;  %358 = vmatpush1.bf16.msra.mxu0 %v818_v10 }
  0x62   :  { %563 = vmatprep.subr.bf16.mxu1 %v725_v0  ;;  %359 = vmatprep.subr.bf16.mxu0 %v821_v11 }
  0x65   :  { %564 = vmatpush3.bf16.msra.mxu1 %v824_v12  ;;  %360 = vmatpush1.bf16.msra.mxu0 %v609_v13 }
  0x66   :  { %565 = vmatprep.subr.bf16.mxu1 %v725_v0  ;;  %361 = vmatprep.subr.bf16.mxu0 %v610_v14 }
  0x69   :  { %566 = vmatpush3.bf16.msra.mxu1 %v612_v15  ;;  %362 = vmatpush1.bf16.msra.mxu0 %v613_v16 }
  0x6a   :  { %567 = vmatprep.subr.bf16.mxu1 %v725_v0  ;;  %363 = vmatprep.subr.bf16.mxu0 %v614_v17 }
  0x6d   :  { %568 = vmatpush3.bf16.msra.mxu1 %v616_v19  ;;  %364 = vmatpush1.bf16.msra.mxu0 %v617_v20 }
  0x6e   :  { %569 = vmatprep.subr.bf16.mxu1 %v725_v0  ;;  %365 = vmatprep.subr.bf16.mxu0 %v618_v22 }
  0x71   :  { %570 = vmatpush3.bf16.msra.mxu1 %v620_v24  ;;  %366 = vmatpush1.bf16.msra.mxu0 %v621_v25 }
  0x72   :  { %571 = vmatprep.subr.bf16.mxu1 %v725_v0  ;;  %367 = vmatprep.subr.bf16.mxu0 %v622_v27 }
  0x75   :  { %572 = vmatpush3.bf16.msra.mxu1 %v624_v29  ;;  %368 = vmatpush1.bf16.msra.mxu0 %v625_v31 }
  0x78   :  { %574 = vmatmul.mubr.bf16.vlgmr.msra.gmra.mrb[0].mxu1 %v108_v28  ;;  %386 = vmatmul.mubr.bf16.vlgmr.msra.gmra.mrb[0].mxu0 %v108_v28 }
 0x14b   :  { %v428_v52 = vpop.f32.mrb[0].mxu1  ;;  %v387_v56 = vpop.f32.mrb[0].mxu0 }
 0x14c   :  { %v436_v55 = vsub.f32 %v101_v49, %v428_v52  ;;  %v575_v57 = vpop.f32.mrb[1].mxu1  ;;  %v434_v59 = vsub.f32 %v99_v51, %v387_v56  ;;  %v389_v60 = vpop.f32.mrb[1].mxu0 }
 0x14d   :  { %v431_v61 = vpop.f32.mrb[2].mxu1  ;;  %v435_v0 = vsub.f32 %v100_v54, %v389_v60  ;;  %v391_v1 = vpop.f32.mrb[2].mxu0 }
 0x14e   :  { %v439_v62 = vmax.f32 %v436_v55, 0.0  ;;  %v459_v63 = vmul.f32 %v453_v50, %v436_v55  ;;  %v576_v2 = vpop.f32.mrb[3].mxu1  ;;  %v437_v3 = vmax.f32 %v434_v59, 0.0  ;;  %v457_v4 = vmul.f32 %v445_v53, %v434_v59  ;;  %v392_v5 = vpop.f32.mrb[3].mxu0 }
 0x14f   :  { %v438_v7 = vmax.f32 %v435_v0, 0.0  ;;  %v458_v8 = vmul.f32 %v449_v58, %v435_v0 }
 0x150   :  { %v462_v6 = vsub.f32 %v439_v62, %v459_v63  ;;  %v460_v9 = vsub.f32 %v437_v3, %v457_v4 }
 0x151   :  { %v461_v10 = vsub.f32 %v438_v7, %v458_v8 }
 0x152   :  { %474 = vst [vmem:[#allocation8 + $0x10] sm:$0xff] %v462_v6  ;;  %472 = vst [vmem:[#allocation8] sm:$0xff] %v460_v9 }
 0x153   :  { %473 = vst [vmem:[#allocation8 + $0x8] sm:$0xff] %v461_v10 }
 0x154   :  { %703 = shalt.err (!%p700_p0)
}
 0x155   :  { %s704_s30 = scalar_lea.hbm %s875_s4, 384 }
 0x156   :  { %p705_p1 = scmp.ne.s32.totalorder %s875_s4, %s704_s30  ;;  %p708_p2 = scmp.lt.u32.totalorder %s704_s30, %s875_s4 }
 0x158   :  { %p710_p3 = pnand %p708_p2, %p705_p1 }
 0x15a   :  { %713 = shalt.err (!%p710_p3)
}
 0x15b   :  { %484 = dma.vmem_to_hbm [thread:$0]  %s482_s26, 384, %s875_s4, [#allocation4]  }
 0x15c   :  { %718 = dma.done.wait [#allocation4], 384  }
 0x15d   :  { %719 = vsyncadd [#allocation4], 4294966912 }
 0x15e   :  { %488 = vsyncpa [#allocation3], 1 }
 0x15f   :  { %489 = vsyncpa [#allocation6], 1 }
 0x160   :  { %490 = vsyncpa [#allocation4], 1 }

</bundles_post_ra>
